<compile_context>
chip_gen: v5e
topology: v5e:2x2
jax: 0.10.0
libtpu: 0.0.40
codegen_flags: <defaults>
</compile_context>

<pallas_src>
import functools

import jax
import jax.numpy as jnp
from jax.experimental import pallas as pl
from jax.experimental.pallas import tpu as pltpu

SMOOTH = 1e-6
LANES = 128
MAX_BLOCK_ROWS = 1024  # (1024,128) f32 = 512 KiB / input block


def _dice_kernel(pred_ref, target_ref, out_ref, acc_inter_ref, acc_sum_ref,
                 *, total_rows, block_rows, need_mask):
    i = pl.program_id(0)

    @pl.when(i == 0)
    def _():
        acc_inter_ref[...] = jnp.zeros_like(acc_inter_ref)
        acc_sum_ref[...] = jnp.zeros_like(acc_sum_ref)

    p = pred_ref[...].astype(jnp.float32)
    t = target_ref[...].astype(jnp.float32)

    if need_mask:
        # Mask rows of the ragged last block that lie past the logical end.
        row_ids = (jax.lax.broadcasted_iota(jnp.int32, (block_rows, LANES), 0)
                   + i * block_rows)
        valid = row_ids < total_rows
        p = jnp.where(valid, p, 0.0)
        t = jnp.where(valid, t, 0.0)

    # Per-lane partial sums (VPU adds + one sublane fold per step).
    acc_inter_ref[...] += jnp.sum(p * t, axis=0, keepdims=True)
    acc_sum_ref[...] += jnp.sum(p + t, axis=0, keepdims=True)

    @pl.when(i == pl.num_programs(0) - 1)
    def _():
        inter = jnp.sum(acc_inter_ref[...], keepdims=True)   # (1, 1)
        total = jnp.sum(acc_sum_ref[...], keepdims=True)     # (1, 1)
        dice = (2.0 * inter + SMOOTH) / (total + SMOOTH)
        out_ref[...] = 1.0 - dice


@jax.jit
def dice_loss(pred, target):
    """Dice loss matching PyTorch DiceLoss.forward semantics."""
    pred_flat = jnp.reshape(pred, (-1,))
    target_flat = jnp.reshape(target, (-1,))
    n = pred_flat.shape[0]

    # Minimal pad (< 128 elements, only when needed) so we can view the data
    # as a lane-dense (rows, 128) slab.  Zero padding contributes nothing to
    # intersection / sums.
    rem = n % LANES
    if rem:
        pad = LANES - rem
        pred_flat = jnp.pad(pred_flat, (0, pad))
        target_flat = jnp.pad(target_flat, (0, pad))
    rows = (n + LANES - 1) // LANES

    pred2d = pred_flat.reshape(rows, LANES)
    target2d = target_flat.reshape(rows, LANES)

    block_rows = min(MAX_BLOCK_ROWS, ((rows + 7) // 8) * 8)
    steps = pl.cdiv(rows, block_rows)
    need_mask = (rows % block_rows) != 0

    kernel = functools.partial(
        _dice_kernel,
        total_rows=rows,
        block_rows=block_rows,
        need_mask=need_mask,
    )

    out = pl.pallas_call(
        kernel,
        out_shape=jax.ShapeDtypeStruct((1, 1), jnp.float32),
        grid_spec=pltpu.PrefetchScalarGridSpec(
            num_scalar_prefetch=0,
            grid=(steps,),
            in_specs=[
                pl.BlockSpec((block_rows, LANES), lambda i: (i, 0)),
                pl.BlockSpec((block_rows, LANES), lambda i: (i, 0)),
            ],
            out_specs=pl.BlockSpec((1, 1), lambda i: (0, 0)),
            scratch_shapes=[
                pltpu.VMEM((1, LANES), jnp.float32),  # intersection partials
                pltpu.VMEM((1, LANES), jnp.float32),  # sum(pred)+sum(target)
            ],
        ),
        compiler_params=pltpu.CompilerParams(
            dimension_semantics=("arbitrary",),
        ),
    )(pred2d, target2d)

    return out[0, 0]


def _dice_loss_ref(pred, target):
    p = jnp.reshape(pred, (-1,)).astype(jnp.float32)
    t = jnp.reshape(target, (-1,)).astype(jnp.float32)
    inter = jnp.sum(p * t)
    dice = (2.0 * inter + SMOOTH) / (jnp.sum(p) + jnp.sum(t) + SMOOTH)
    return 1.0 - dice


if __name__ == "__main__":
    key = jax.random.PRNGKey(0)
    k1, k2, k3, k4 = jax.random.split(key, 4)

    # NCHW segmentation-style inputs: batch=2, channels=4, 16x16 spatial.
    pred = jax.nn.sigmoid(jax.random.normal(k1, (2, 4, 16, 16), dtype=jnp.float32))
    target = (jax.random.uniform(k2, (2, 4, 16, 16)) > 0.5).astype(jnp.float32)

    loss = dice_loss(pred, target)
    jax.block_until_ready(loss)
    ref = _dice_loss_ref(pred, target)
    assert jnp.allclose(loss, ref, atol=1e-5, rtol=1e-5), (loss, ref)

    # Odd-sized input exercises the minimal lane pad + in-kernel row masking.
    pred2 = jax.nn.sigmoid(jax.random.normal(k3, (1, 1, 36, 36), dtype=jnp.float32))
    target2 = (jax.random.uniform(k4, (1, 1, 36, 36)) > 0.5).astype(jnp.float32)
    loss2 = dice_loss(pred2, target2)
    jax.block_until_ready(loss2)
    ref2 = _dice_loss_ref(pred2, target2)
    assert jnp.allclose(loss2, ref2, atol=1e-5, rtol=1e-5), (loss2, ref2)

    print("KERNEL_OK")
</pallas_src>

<mosaic_0001>
module attributes {stable_mosaic.version = 11 : i64} {
  func.func @_dice_kernel(%arg0: i32, %arg1: memref<16x128xf32, #tpu.memory_space<vmem>>, %arg2: memref<16x128xf32, #tpu.memory_space<vmem>>, %arg3: memref<1x1xf32, #tpu.memory_space<vmem>>, %arg4: memref<1x128xf32, #tpu.memory_space<vmem>>, %arg5: memref<1x128xf32, #tpu.memory_space<vmem>>) attributes {dimension_semantics = [#tpu.dimension_semantics<arbitrary>], iteration_bounds = array<i64: 1>, scalar_prefetch = 0 : i64, scratch_operands = 2 : i64, tpu.core_type = #tpu.core_type<tc>, window_params = [{transform_indices = @transform_0, window_bounds = array<i64: 16, 128>}, {transform_indices = @transform_1, window_bounds = array<i64: 16, 128>}, {pipeline_mode = #tpu.pipeline_mode<synchronous>, transform_indices = @transform_2, window_bounds = array<i64: 1, 1>}]} {
    %c0_i32 = arith.constant 0 : i32
    %0 = arith.cmpi eq, %arg0, %c0_i32 : i32
    %1 = arith.extui %0 : i1 to i32
    %c0_i32_0 = arith.constant 0 : i32
    %2 = arith.cmpi ne, %1, %c0_i32_0 : i32
    scf.if %2 {
      %cst_15 = arith.constant 0.000000e+00 : f32
      %20 = vector.broadcast %cst_15 : f32 to vector<1x128xf32>
      %c0_16 = arith.constant 0 : index
      %c0_17 = arith.constant 0 : index
      %21 = vector.load %arg4[%c0_16, %c0_17] : memref<1x128xf32, #tpu.memory_space<vmem>>, vector<1x128xf32>
      tpu.vector_store %arg4[%c0_16, %c0_17], %20 {strides = array<i32>} : memref<1x128xf32, #tpu.memory_space<vmem>>, vector<1x128xf32>,
      %cst_18 = arith.constant 0.000000e+00 : f32
      %22 = vector.broadcast %cst_18 : f32 to vector<1x128xf32>
      %c0_19 = arith.constant 0 : index
      %c0_20 = arith.constant 0 : index
      %23 = vector.load %arg5[%c0_19, %c0_20] : memref<1x128xf32, #tpu.memory_space<vmem>>, vector<1x128xf32>
      tpu.vector_store %arg5[%c0_19, %c0_20], %22 {strides = array<i32>} : memref<1x128xf32, #tpu.memory_space<vmem>>, vector<1x128xf32>,
    } else {
    }
    %c0 = arith.constant 0 : index
    %c0_1 = arith.constant 0 : index
    %3 = vector.load %arg1[%c0, %c0_1] : memref<16x128xf32, #tpu.memory_space<vmem>>, vector<16x128xf32>
    %c0_2 = arith.constant 0 : index
    %c0_3 = arith.constant 0 : index
    %4 = vector.load %arg2[%c0_2, %c0_3] : memref<16x128xf32, #tpu.memory_space<vmem>>, vector<16x128xf32>
    %c0_4 = arith.constant 0 : index
    %c0_5 = arith.constant 0 : index
    %5 = vector.load %arg4[%c0_4, %c0_5] : memref<1x128xf32, #tpu.memory_space<vmem>>, vector<1x128xf32>
    %6 = arith.mulf %3, %4 : vector<16x128xf32>
    %cst = arith.constant dense<0.000000e+00> : vector<128xf32>
    %7 = vector.multi_reduction <add>, %6, %cst [0] : vector<16x128xf32> to vector<128xf32>
    %8 = vector.shape_cast %7 : vector<128xf32> to vector<1x128xf32>
    %9 = arith.addf %5, %8 : vector<1x128xf32>
    %c0_6 = arith.constant 0 : index
    %c0_7 = arith.constant 0 : index
    %10 = vector.load %arg4[%c0_6, %c0_7] : memref<1x128xf32, #tpu.memory_space<vmem>>, vector<1x128xf32>
    tpu.vector_store %arg4[%c0_6, %c0_7], %9 {strides = array<i32>} : memref<1x128xf32, #tpu.memory_space<vmem>>, vector<1x128xf32>,
    %c0_8 = arith.constant 0 : index
    %c0_9 = arith.constant 0 : index
    %11 = vector.load %arg5[%c0_8, %c0_9] : memref<1x128xf32, #tpu.memory_space<vmem>>, vector<1x128xf32>
    %12 = arith.addf %3, %4 : vector<16x128xf32>
    %cst_10 = arith.constant dense<0.000000e+00> : vector<128xf32>
    %13 = vector.multi_reduction <add>, %12, %cst_10 [0] : vector<16x128xf32> to vector<128xf32>
    %14 = vector.shape_cast %13 : vector<128xf32> to vector<1x128xf32>
    %15 = arith.addf %11, %14 : vector<1x128xf32>
    %c0_11 = arith.constant 0 : index
    %c0_12 = arith.constant 0 : index
    %16 = vector.load %arg5[%c0_11, %c0_12] : memref<1x128xf32, #tpu.memory_space<vmem>>, vector<1x128xf32>
    tpu.vector_store %arg5[%c0_11, %c0_12], %15 {strides = array<i32>} : memref<1x128xf32, #tpu.memory_space<vmem>>, vector<1x128xf32>,
    %c0_i32_13 = arith.constant 0 : i32
    %17 = arith.cmpi eq, %arg0, %c0_i32_13 : i32
    %18 = arith.extui %17 : i1 to i32
    %c0_i32_14 = arith.constant 0 : i32
    %19 = arith.cmpi ne, %18, %c0_i32_14 : i32
    scf.if %19 {
      %c0_15 = arith.constant 0 : index
      %c0_16 = arith.constant 0 : index
      %20 = vector.load %arg4[%c0_15, %c0_16] : memref<1x128xf32, #tpu.memory_space<vmem>>, vector<1x128xf32>
      %21 = vector.shape_cast %20 : vector<1x128xf32> to vector<1x1x128xf32>
      %cst_17 = arith.constant dense<0.000000e+00> : vector<1xf32>
      %22 = vector.multi_reduction <add>, %21, %cst_17 [1, 2] : vector<1x1x128xf32> to vector<1xf32>
      %23 = vector.shape_cast %22 : vector<1xf32> to vector<1x1x1xf32>
      %24 = vector.extract %23[0, 0, 0] : f32 from vector<1x1x1xf32>
      %25 = vector.broadcast %24 : f32 to vector<1x1xf32>
      %c0_18 = arith.constant 0 : index
      %c0_19 = arith.constant 0 : index
      %26 = vector.load %arg5[%c0_18, %c0_19] : memref<1x128xf32, #tpu.memory_space<vmem>>, vector<1x128xf32>
      %27 = vector.shape_cast %26 : vector<1x128xf32> to vector<1x1x128xf32>
      %cst_20 = arith.constant dense<0.000000e+00> : vector<1xf32>
      %28 = vector.multi_reduction <add>, %27, %cst_20 [1, 2] : vector<1x1x128xf32> to vector<1xf32>
      %29 = vector.shape_cast %28 : vector<1xf32> to vector<1x1x1xf32>
      %30 = vector.extract %29[0, 0, 0] : f32 from vector<1x1x1xf32>
      %31 = vector.broadcast %30 : f32 to vector<1x1xf32>
      %cst_21 = arith.constant 2.000000e+00 : f32
      %32 = vector.broadcast %cst_21 : f32 to vector<1x1xf32>
      %33 = arith.mulf %32, %25 : vector<1x1xf32>
      %cst_22 = arith.constant 9.99999997E-7 : f32
      %34 = vector.broadcast %cst_22 : f32 to vector<1x1xf32>
      %35 = arith.addf %33, %34 : vector<1x1xf32>
      %cst_23 = arith.constant 9.99999997E-7 : f32
      %36 = vector.broadcast %cst_23 : f32 to vector<1x1xf32>
      %37 = arith.addf %31, %36 : vector<1x1xf32>
      %38 = arith.divf %35, %37 : vector<1x1xf32>
      %cst_24 = arith.constant 1.000000e+00 : f32
      %39 = vector.broadcast %cst_24 : f32 to vector<1x1xf32>
      %40 = arith.subf %39, %38 : vector<1x1xf32>
      %c0_25 = arith.constant 0 : index
      %c0_26 = arith.constant 0 : index
      %41 = vector.load %arg3[%c0_25, %c0_26] : memref<1x1xf32, #tpu.memory_space<vmem>>, vector<1x1xf32>
      tpu.vector_store %arg3[%c0_25, %c0_26], %40 {strides = array<i32>} : memref<1x1xf32, #tpu.memory_space<vmem>>, vector<1x1xf32>,
    } else {
    }
    return
  }
  func.func @transform_0(%arg0: i32) -> (i32, i32) {
    %c0_i32 = arith.constant 0 : i32
    %c0_i32_0 = arith.constant 0 : i32
    return %arg0, %c0_i32 : i32, i32
  }
  func.func @transform_1(%arg0: i32) -> (i32, i32) {
    %c0_i32 = arith.constant 0 : i32
    %c0_i32_0 = arith.constant 0 : i32
    return %arg0, %c0_i32 : i32, i32
  }
  func.func @transform_2(%arg0: i32) -> (i32, i32) {
    %c0_i32 = arith.constant 0 : i32
    %c0_i32_0 = arith.constant 0 : i32
    %c0_i32_1 = arith.constant 0 : i32
    return %c0_i32, %c0_i32_0 : i32, i32
  }
}

</mosaic_0001>

<bundles_post_ra>
// kernel: dice_loss.1
= control target key start
LH: loop header
LB: loop body
LE: loop exit
PB: predicated region body
PF: predicated region fallthrough
CT: control target
= control target key end

     0   :  { %v145_v3 = vmov 0.0   ;;  %s177_s0 = inlined_call_operand.vmem [shape: f32[16,128], index: 0, kind: input, shape index: {}]   ;;  %s178_s1 = inlined_call_operand.vmem [shape: f32[16,128], index: 1, kind: input, shape index: {}]   ;;  %s179_s2 = inlined_call_operand.hbm [shape: f32[1,1], index: 2, kind: output, shape index: {}]  }
   0x1   :  { %v18_v0 = vld [vmem:[%s177_s0] sm:$0xff]  ;;  %v19_v1 = vld [vmem:[%s177_s0 + $0x8] sm:$0xff]  ;;  %16 = vst [vmem:[#allocation2] sm:$0x1] %v145_v3 }
   0x2   :  { %v20_v2 = vld [vmem:[%s178_s1] sm:$0xff]  ;;  %v21_v4 = vld [vmem:[%s178_s1 + $0x8] sm:$0xff] }
   0x3   :  { %v23_v5 = vmul.f32 %v20_v2, %v18_v0  ;;  %v35_v6 = vadd.f32 %v20_v2, %v18_v0 }
   0x4   :  { %7 = vsyncpa [#allocation5], 0  ;;  %v24_v7 = vmul.f32 %v21_v4, %v19_v1  ;;  %17 = vst [vmem:[#allocation3] sm:$0x1] %v145_v3  ;;  %v36_v8 = vadd.f32 %v21_v4, %v19_v1  ;;  %vm50_vm0 = vcmask 1040384   ;;  %s146_s17 = smov [#allocation4]  }
   0x5   :  { %s100_s18 = sshll.u32 %s146_s17, 4  ;;  %s102_s21 = sshll.u32 %s179_s2, 4  ;;  %vm93_vm5 = vcmask 0   ;;  %s101_s18 = int_to_ptr.vmem [resolvable:$true] %s100_s18  ;;  %s103_s21 = int_to_ptr.hbm [resolvable:$true] %s102_s21 }
   0x6   :  { %v25_v9 = vadd.f32 %v24_v7, %v23_v5  ;;  %v37_v10 = vadd.f32 %v36_v8, %v35_v6 }
   0x8   :  { %v26_v11 = vrot.slane %v25_v9, 4  ;;  %v38_v12 = vrot.slane %v37_v10, 4  ;;  %v22_v21 = vld [vmem:[#allocation2] sm:$0x1] }
   0xa   :  { %v27_v13 = vadd.f32 %v26_v11, %v25_v9  ;;  %v39_v14 = vadd.f32 %v38_v12, %v37_v10 }
   0xb   :  { %v34_v22 = vld [vmem:[#allocation3] sm:$0x1] }
   0xc   :  { %v28_v15 = vrot.slane %v27_v13, 2  ;;  %v40_v16 = vrot.slane %v39_v14, 2 }
   0xe   :  { %v29_v17 = vadd.f32 %v28_v15, %v27_v13  ;;  %v41_v18 = vadd.f32 %v40_v16, %v39_v14 }
  0x10   :  { %v30_v19 = vrot.slane %v29_v17, 1  ;;  %v42_v20 = vrot.slane %v41_v18, 1 }
  0x12   :  { %v31_v23 = vadd.f32 %v30_v19, %v29_v17  ;;  %v43_v24 = vadd.f32 %v42_v20, %v41_v18 }
  0x14   :  { %v32_v25 = vadd.f32 %v31_v23, %v22_v21  ;;  %v44_v26 = vadd.f32 %v43_v24, %v34_v22 }
  0x16   :  { %33 = vst [vmem:[#allocation2] sm:$0x1] %v32_v25 }
  0x17   :  { %45 = vst [vmem:[#allocation3] sm:$0x1] %v44_v26 }
  0x1d   :  { %v49_v27 = vld [vmem:[#allocation2] sm:$0x1] }
  0x1e   :  { %v51_v28 = vsel %vm50_vm0, %v49_v27, 0.0  ;;  %v62_v29 = vld [vmem:[#allocation3] sm:$0x1] }
  0x1f   :  { %52 = vadd.xlane.f32.xlu0 %v51_v28  ;;  %v63_v30 = vsel %vm50_vm0, %v62_v29, 0.0 }
  0x27   :  { %64 = vadd.xlane.f32.xlu0 %v63_v30 }
  0x92   :  { %v53_v31 = vpop.xlane.xlu0 %52 }
  0x93   :  { %v54_v32 = vrot.slane %v53_v31, 4 }
  0x95   :  { %v55_v33 = vadd.f32 %v54_v32, %v53_v31 }
  0x97   :  { %v56_v34 = vrot.slane %v55_v33, 2 }
  0x99   :  { %v57_v35 = vadd.f32 %v56_v34, %v55_v33 }
  0x9a   :  { %v65_v36 = vpop.xlane.xlu0 %64 }
  0x9b   :  { %v66_v37 = vrot.slane %v65_v36, 4  ;;  %v58_v38 = vrot.slane %v57_v35, 1 }
  0x9d   :  { %v67_v39 = vadd.f32 %v66_v37, %v65_v36  ;;  %v59_v40 = vadd.f32 %v58_v38, %v57_v35 }
  0x9f   :  { %v68_v41 = vrot.slane %v67_v39, 2  ;;  %111 = vpush %v59_v40 }
  0xa1   :  { %v69_v42 = vadd.f32 %v68_v41, %v67_v39 }
  0xa3   :  { %v70_v43 = vrot.slane %v69_v42, 1 }
  0xa5   :  { %v71_v44 = vadd.f32 %v70_v43, %v69_v42 }
  0xa7   :  { %113 = vpush %v71_v44 }
  0xd0   :  { %s112_s0 = spop %111 }
  0xd1   :  { %v61_v49 = vstv %s112_s0 }
  0xd2   :  { %v74_v52 = vmul.f32 2.0, %v61_v49 }
  0xd4   :  { %v75_v57 = vadd.f32 1e-06, %v74_v52 }
  0xd8   :  { %s114_s1 = spop %113 }
  0xd9   :  { %v73_v45 = vstv %s114_s1 }
  0xda   :  { %v76_v46 = vadd.f32 1e-06, %v73_v45 }
  0xdc   :  { %117 = vrcp.f32 %v76_v46  ;;  %v88_v51 = vand.u32 2147483648, %v76_v46  ;;  %v86_v54 = vand.u32 2147483647, %v76_v46  ;;  %vm82_vm2 = vweird.f32 %v76_v46 }
  0xde   :  { %v89_v56 = vor.u32 1.1754944e-38, %v88_v51  ;;  %vm87_vm4 = vcmp.eq.f32.partialorder %v86_v54, 8.507059e+37 }
  0xe2   :  { %v118_v47 = vpop.eup %117 }
  0xe3   :  { %v78_v48 = vmul.f32 %v118_v47, %v76_v46  ;;  %vm83_vm1 = vweird.f32 %v118_v47 }
  0xe4   :  { %vm84_vm3 = vmor %vm82_vm2, %vm83_vm1 }
  0xe5   :  { %v79_v50 = vsub.f32 1.0, %v78_v48 }
  0xe7   :  { %v80_v53 = vmul.f32 %v118_v47, %v79_v50 }
  0xe9   :  { %v81_v55 = vadd.f32 %v118_v47, %v80_v53 }
  0xeb   :  { %v85_v58 = vsel %vm84_vm3, %v118_v47, %v81_v55 }
  0xec   :  { %v90_v59 = vsel %vm87_vm4, %v89_v56, %v85_v58 }
  0xed   :  { %v91_v60 = vmul.f32 %v90_v59, %v75_v57 }
  0xef   :  { %v92_v61 = vsub.f32 1.0, %v91_v60 }
  0xf1   :  { %94 = vst.msk [vmem:[#allocation4] sm:$0x1] %vm93_vm5, %v92_v61 }
  0xf2   :  { %105 = dma.vmem_to_hbm [thread:$0]  %s101_s18, 16, %s103_s21, [#allocation5]  }
  0xf3   :  { %143 = dma.done.wait [#allocation5], 16  }
  0xf4   :  { %144 = vsyncadd [#allocation5], 4294967280 }
  0xf5   :  { %110 = vsyncpa [#allocation5], 1 }

</bundles_post_ra>
